<compile_context>
chip_gen: v6e
topology: v6e:2x2x1
jax: 0.10.0
libtpu: 0.0.40
codegen_flags: <defaults>
</compile_context>

<pallas_src>
import functools

import numpy as np
import jax
import jax.numpy as jnp
from jax import lax
from jax.experimental import pallas as pl
from jax.experimental.pallas import tpu as pltpu


# ----------------------------------------------------------------------------
# Small helpers / per-generation budgets
# ----------------------------------------------------------------------------
def _pad_up(x, m):
    return ((x + m - 1) // m) * m


def _sublane_align(dtype):
    # rows per packed sublane group: 8 for 4-byte, 16 for bf16, 32 for int8
    return max(8, 32 // jnp.dtype(dtype).itemsize)


def _vmem_budget():
    """(per-step block budget, scoped-VMEM request) chosen per TPU generation.

    v5e/v6e have 128 MiB physical VMEM -> bigger blocks amortize the
    ~0.35us/grid-step overhead; v7x (64 MiB) and unknown chips keep the
    conservative numbers already verified to compile."""
    try:
        cap = int(pltpu.get_tpu_info().vmem_capacity_bytes)
    except Exception:
        cap = 64 * 1024 * 1024
    if cap >= 96 * 1024 * 1024:                    # v5e / v6e
        return 48 * 1024 * 1024, 80 * 1024 * 1024
    return 20 * 1024 * 1024, 32 * 1024 * 1024      # v7x / unknown


_BLOCK_BUDGET_BYTES, _VMEM_LIMIT_BYTES = _vmem_budget()


def _kron_max_elems(dtype):
    # f32 kron matmuls have ~10x the FLOP/byte of the separable path and are
    # not hidden under HBM on v5e's f32 MXU -> use a smaller threshold for f32.
    return (1 << 20) if jnp.dtype(dtype).itemsize <= 2 else (1 << 18)


def _row_block(total, vmem_rows, align, min_steps=4):
    """Pick a row-block size: sublane-aligned, VMEM-bounded, and (when the
    problem is big enough) small enough that the grid has >= min_steps
    iterations so the BlockSpec pipeline can overlap DMA with compute and the
    'parallel' axis can be sharded across v7x's two TensorCores."""
    if total <= align:
        return total                                   # full (exempt) block
    bc = max(align, (min(vmem_rows, total) // align) * align)
    if total >= min_steps * align:
        cap = max(align, ((total // min_steps) // align) * align)
        bc = min(bc, cap)
    return bc


# ----------------------------------------------------------------------------
# Interpolation weight matrices (host-side, cached + device-resident)
# ----------------------------------------------------------------------------
def _interp_matrix(out_size, in_size, mode, align_corners):
    """W with shape (out_size, in_size) s.t. out = W @ in (1-D interpolation)."""
    W = np.zeros((out_size, in_size), dtype=np.float64)
    idx_out = np.arange(out_size)
    if mode == "nearest":
        src = (idx_out * in_size) // out_size          # PyTorch nearest rule
        src = np.clip(src, 0, in_size - 1)
        W[idx_out, src] = 1.0
    elif mode in ("bilinear", "linear"):
        if in_size == 1:
            W[:, 0] = 1.0
            return W.astype(np.float32)
        if align_corners:
            src = idx_out * ((in_size - 1) / max(out_size - 1, 1))
        else:
            src = (idx_out + 0.5) * (in_size / out_size) - 0.5
            src = np.clip(src, 0.0, in_size - 1)
        lo = np.clip(np.floor(src).astype(np.int64), 0, in_size - 1)
        hi = np.minimum(lo + 1, in_size - 1)
        frac = src - lo
        np.add.at(W, (idx_out, lo), 1.0 - frac)
        np.add.at(W, (idx_out, hi), frac)
    else:
        raise NotImplementedError(f"mode={mode!r} not supported")
    return W.astype(np.float32)


@functools.lru_cache(maxsize=64)
def _cached_kron_weight(h_in, w_in, h_out, w_out, mode, align_corners, dtype_name):
    wr = _interp_matrix(h_out, h_in, mode, align_corners)
    wc = _interp_matrix(w_out, w_in, mode, align_corners)
    return jnp.asarray(np.kron(wr, wc).T, dtype=jnp.dtype(dtype_name))


@functools.lru_cache(maxsize=64)
def _cached_separable_weights(h_in, w_in, h_out, w_out, mode, align_corners,
                              dtype_name):
    dt = jnp.dtype(dtype_name)
    wr = _interp_matrix(h_out, h_in, mode, align_corners)
    wc = _interp_matrix(w_out, w_in, mode, align_corners)
    return jnp.asarray(wr, dtype=dt), jnp.asarray(wc.T, dtype=dt)


# ----------------------------------------------------------------------------
# Path 1: nearest with integer row scale  (replicate kernel, no weight operand)
# ----------------------------------------------------------------------------
def _make_nearest_kernel(sh, w_in, w_out):
    def kernel(x_ref, o_ref):
        x = x_ref[...]                                           # (R, W_in)
        # 0/1 column selector built on the VPU: sel[w, j] = 1 iff
        # floor(j*W_in/W_out) == w  <=>  w*W_out <= j*W_in < (w+1)*W_out.
        col = lax.broadcasted_iota(jnp.int32, (w_in, w_out), 1)
        row = lax.broadcasted_iota(jnp.int32, (w_in, w_out), 0)
        js = col * w_in
        sel = jnp.logical_and(row * w_out <= js, js < (row + 1) * w_out)
        sel = sel.astype(x.dtype)
        # Column replication: one small-contraction (W_in) matmul on the
        # *un-replicated* rows; exact because each output pulls one input.
        y = jnp.dot(x, sel, preferred_element_type=jnp.float32)
        y = y.astype(o_ref.dtype)                                # (R, W_out)
        # Row replication is free: tile along lanes -> dense (R, sh*W_out) store.
        if sh > 1:
            y = jnp.concatenate([y] * sh, axis=-1)
        o_ref[...] = y
    return kernel


def _resize_nearest_rows(x, h_out, w_out):
    N, C, h_in, w_in = x.shape
    sh = h_out // h_in
    rows = N * C * h_in
    x2 = x.reshape(rows, w_in)

    itemsize = jnp.dtype(x.dtype).itemsize
    align = _sublane_align(x.dtype)
    per_row = ((_pad_up(w_in, 128) + _pad_up(sh * w_out, 128)) * itemsize * 2
               + _pad_up(w_out, 128) * 4)                # + f32 intermediate
    vmem_rows = max(align, _BLOCK_BUDGET_BYTES // per_row)
    r = _row_block(rows, vmem_rows, align)

    out = pl.pallas_call(
        _make_nearest_kernel(sh, w_in, w_out),
        out_shape=jax.ShapeDtypeStruct((rows, sh * w_out), x.dtype),
        grid=(pl.cdiv(rows, r),),
        in_specs=[pl.BlockSpec((r, w_in), lambda g: (g, 0))],
        out_specs=pl.BlockSpec((r, sh * w_out), lambda g: (g, 0)),
        compiler_params=pltpu.CompilerParams(
            dimension_semantics=("parallel",),
            vmem_limit_bytes=_VMEM_LIMIT_BYTES),
    )(x2)
    return out.reshape(N, C, h_out, w_out)


# ----------------------------------------------------------------------------
# Path 2: fused Kronecker matmul (small sizes, bilinear / non-integer nearest)
# ----------------------------------------------------------------------------
def _kron_kernel(w_ref, x_ref, o_ref):
    x = x_ref[...]                                               # (BC, K_in)
    if x.dtype != w_ref.dtype:
        x = x.astype(w_ref.dtype)
    acc = jnp.dot(x, w_ref[...], preferred_element_type=jnp.float32)
    o_ref[...] = acc.astype(o_ref.dtype)


def _resize_kron(x2, wfull_t):
    B, k_in = x2.shape
    k_out = wfull_t.shape[1]
    itemsize = jnp.dtype(x2.dtype).itemsize
    w_itemsize = jnp.dtype(wfull_t.dtype).itemsize

    # Budget: double-buffered weights + double-buffered (in + out) row blocks.
    w_bytes = _pad_up(k_in, 8) * _pad_up(k_out, 128) * w_itemsize
    per_row = (_pad_up(k_in, 128) + _pad_up(k_out, 128)) * itemsize * 2
    avail = max(_BLOCK_BUDGET_BYTES - 2 * w_bytes, 16 * per_row)
    align = _sublane_align(x2.dtype)
    bc = _row_block(B, avail // per_row, align)

    out = pl.pallas_call(
        _kron_kernel,
        out_shape=jax.ShapeDtypeStruct((B, k_out), x2.dtype),
        grid=(pl.cdiv(B, bc),),
        in_specs=[
            pl.BlockSpec((k_in, k_out), lambda g: (0, 0)),   # invariant weights
            pl.BlockSpec((bc, k_in), lambda g: (g, 0)),
        ],
        out_specs=pl.BlockSpec((bc, k_out), lambda g: (g, 0)),
        compiler_params=pltpu.CompilerParams(
            dimension_semantics=("parallel",),
            vmem_limit_bytes=_VMEM_LIMIT_BYTES),
    )(wfull_t, x2)
    return out


# ----------------------------------------------------------------------------
# Path 3: batched separable two-matmul kernel (large sizes)
# ----------------------------------------------------------------------------
def _make_separable_kernel(h_first, bc):
    if h_first:
        def kernel(wr_ref, wct_ref, x_ref, o_ref, t_ref):
            wr = wr_ref[...]                                     # (H_out, H_in)
            # Narrow pass: small per-image matmuls, fully unrolled so the
            # scheduler interleaves MXU pushes/pops across images.
            def hbody(b, carry):
                xb = x_ref[b]
                if xb.dtype != wr.dtype:
                    xb = xb.astype(wr.dtype)
                t_ref[b] = jnp.dot(wr, xb, preferred_element_type=jnp.float32
                                   ).astype(t_ref.dtype)
                return carry
            lax.fori_loop(0, bc, hbody, 0, unroll=True)
            # Wide pass: ONE tall, lane-dense matmul over the whole block.
            h_out, w_in = t_ref.shape[1], t_ref.shape[2]
            w_out = wct_ref.shape[1]
            t = t_ref[...].reshape(bc * h_out, w_in)
            y = jnp.dot(t, wct_ref[...], preferred_element_type=jnp.float32)
            o_ref[...] = y.reshape(bc, h_out, w_out).astype(o_ref.dtype)
        return kernel

    def kernel(wr_ref, wct_ref, x_ref, o_ref, t_ref):
        x = x_ref[...]                                           # (bc, H_in, W_in)
        if x.dtype != wct_ref.dtype:
            x = x.astype(wct_ref.dtype)
        _, h_in, w_in = x_ref.shape
        w_out = wct_ref.shape[1]
        # Wide pass first: one tall, lane-dense matmul over the whole block.
        y = jnp.dot(x.reshape(bc * h_in, w_in), wct_ref[...],
                    preferred_element_type=jnp.float32)
        t_ref[...] = y.reshape(bc, h_in, w_out).astype(t_ref.dtype)
        wr = wr_ref[...]
        def hbody(b, carry):
            o_ref[b] = jnp.dot(wr, t_ref[b], preferred_element_type=jnp.float32
                               ).astype(o_ref.dtype)
            return carry
        lax.fori_loop(0, bc, hbody, 0, unroll=True)
    return kernel


def _resize_separable(x3, wr, wct, h_out, w_out):
    B, h_in, w_in = x3.shape
    itemsize = jnp.dtype(x3.dtype).itemsize
    w_itemsize = jnp.dtype(wr.dtype).itemsize

    # Cheaper matmul order (fewer total MACs / smaller intermediate).
    h_first = h_out * w_in * (h_in + w_out) <= h_in * w_out * (w_in + h_out)

    in_img = _pad_up(h_in, 8) * _pad_up(w_in, 128) * itemsize
    out_img = _pad_up(h_out, 8) * _pad_up(w_out, 128) * itemsize
    t_img = (_pad_up(h_out, 8) * _pad_up(w_in, 128) if h_first
             else _pad_up(h_in, 8) * _pad_up(w_out, 128)) * w_itemsize
    w_bytes = (_pad_up(h_out, 8) * _pad_up(h_in, 128)
               + _pad_up(w_in, 8) * _pad_up(w_out, 128)) * w_itemsize
    per_img = 2 * (in_img + out_img) + t_img
    avail = max(_BLOCK_BUDGET_BYTES - 2 * w_bytes, per_img)
    bc = max(1, min(int(avail // per_img), 16, B))
    if B >= 4:                       # keep >= ~4 grid steps for the pipeline
        bc = min(bc, max(1, B // 4))
    elif B >= 2:                     # at least 2 steps (v7x megacore)
        bc = min(bc, max(1, B // 2))

    t_shape = (bc, h_out, w_in) if h_first else (bc, h_in, w_out)
    out = pl.pallas_call(
        _make_separable_kernel(h_first, bc),
        out_shape=jax.ShapeDtypeStruct((B, h_out, w_out), x3.dtype),
        grid=(pl.cdiv(B, bc),),
        in_specs=[
            pl.BlockSpec((h_out, h_in), lambda g: (0, 0)),       # invariant
            pl.BlockSpec((w_in, w_out), lambda g: (0, 0)),       # invariant
            pl.BlockSpec((bc, h_in, w_in), lambda g: (g, 0, 0)),
        ],
        out_specs=pl.BlockSpec((bc, h_out, w_out), lambda g: (g, 0, 0)),
        scratch_shapes=[pltpu.VMEM(t_shape, wr.dtype)],
        compiler_params=pltpu.CompilerParams(
            dimension_semantics=("parallel",),
            vmem_limit_bytes=_VMEM_LIMIT_BYTES),
    )(wr, wct, x3)
    return out


# ----------------------------------------------------------------------------
# Public entry point
# ----------------------------------------------------------------------------
def resize_pallas(x, size, mode="nearest", align_corners=None):
    """x: (N, C, H, W) -> (N, C, size[0], size[1]), dtype preserved."""
    N, C, h_in, w_in = x.shape
    h_out, w_out = int(size[0]), int(size[1])
    B = N * C

    # Fast path: nearest with an integer row scale (covers scale_factor=2 etc.)
    # -> gather/replicate kernel, bit-exact, no interpolation weights at all.
    if mode == "nearest" and h_out % h_in == 0:
        return _resize_nearest_rows(x, h_out, w_out)

    w_dtype = jnp.bfloat16 if x.dtype == jnp.bfloat16 else jnp.float32
    dtype_name = jnp.dtype(w_dtype).name
    k_in, k_out = h_in * w_in, h_out * w_out

    if k_in * k_out <= _kron_max_elems(x.dtype):
        wfull_t = _cached_kron_weight(h_in, w_in, h_out, w_out, mode,
                                      align_corners, dtype_name)
        out = _resize_kron(x.reshape(B, k_in), wfull_t)
        return out.reshape(N, C, h_out, w_out)

    wr, wct = _cached_separable_weights(h_in, w_in, h_out, w_out, mode,
                                        align_corners, dtype_name)
    out = _resize_separable(x.reshape(B, h_in, w_in), wr, wct, h_out, w_out)
    return out.reshape(N, C, h_out, w_out)


# ----------------------------------------------------------------------------
# Module-equivalent wrapper (mirrors mmseg Upsample.forward)
# ----------------------------------------------------------------------------
class Upsample:
    def __init__(self, size=None, scale_factor=None, mode="nearest",
                 align_corners=None):
        self.size = size
        if isinstance(scale_factor, tuple):
            self.scale_factor = tuple(float(f) for f in scale_factor)
        else:
            self.scale_factor = float(scale_factor) if scale_factor else None
        self.mode = mode
        self.align_corners = align_corners

    def __call__(self, x):
        if not self.size:
            if isinstance(self.scale_factor, tuple):
                size = [int(t * f) for t, f in zip(x.shape[-2:], self.scale_factor)]
            else:
                size = [int(t * self.scale_factor) for t in x.shape[-2:]]
        else:
            size = self.size
        # NOTE: the host-side shape-compatibility warning in mmseg `resize` is
        # a no-op for the computation and is omitted here.
        return resize_pallas(x, size, self.mode, self.align_corners)


# ----------------------------------------------------------------------------
if __name__ == "__main__":
    key0, key1, key2 = jax.random.split(jax.random.PRNGKey(0), 3)
    x = jax.random.normal(key0, (2, 4, 16, 16), dtype=jnp.float32)

    # 1) Default-mode module: nearest, scale_factor=2 -> replicate kernel.
    up = Upsample(scale_factor=2.0, mode="nearest")
    y = jax.block_until_ready(up(x))
    assert y.shape == (2, 4, 32, 32)
    idx = (np.arange(32) * 16) // 32               # PyTorch nearest source index
    ref = np.asarray(x)[:, :, idx][:, :, :, idx]
    np.testing.assert_allclose(np.asarray(y), ref, rtol=0, atol=0)

    # 2) Bilinear, align_corners=True (small) -> fused kron path.
    up_bl = Upsample(scale_factor=2.0, mode="bilinear", align_corners=True)
    y_bl = jax.block_until_ready(up_bl(x))
    wr = _interp_matrix(32, 16, "bilinear", True)
    wc = _interp_matrix(32, 16, "bilinear", True)
    ref_bl = np.einsum("oh,nchw,pw->ncop", wr, np.asarray(x), wc)
    np.testing.assert_allclose(np.asarray(y_bl), ref_bl, rtol=1e-4, atol=1e-4)

    # 3) Larger nearest (64x96 -> 128x192) -> replicate kernel, bit-exact.
    x2 = jax.random.normal(key1, (1, 2, 64, 96), dtype=jnp.float32)
    up2 = Upsample(size=(128, 192), mode="nearest")
    y2 = jax.block_until_ready(up2(x2))
    assert y2.shape == (1, 2, 128, 192)
    ih = (np.arange(128) * 64) // 128
    iw = (np.arange(192) * 96) // 192
    ref2 = np.asarray(x2)[:, :, ih][:, :, :, iw]
    np.testing.assert_allclose(np.asarray(y2), ref2, rtol=0, atol=0)

    # 4) Larger bilinear (40x64 -> 80x128) -> batched separable two-matmul path.
    x3 = jax.random.normal(key2, (1, 2, 40, 64), dtype=jnp.float32)
    up3 = Upsample(scale_factor=2.0, mode="bilinear", align_corners=False)
    y3 = jax.block_until_ready(up3(x3))
    assert y3.shape == (1, 2, 80, 128)
    wr3 = _interp_matrix(80, 40, "bilinear", False)
    wc3 = _interp_matrix(128, 64, "bilinear", False)
    ref3 = np.einsum("oh,nchw,pw->ncop", wr3, np.asarray(x3), wc3)
    np.testing.assert_allclose(np.asarray(y3), ref3, rtol=1e-4, atol=1e-4)

    print("KERNEL_OK")
</pallas_src>

<mosaic_0001>
module attributes {stable_mosaic.version = 11 : i64} {
  func.func @kernel(%arg0: i32, %arg1: memref<32x16xf32, #tpu.memory_space<vmem>>, %arg2: memref<32x64xf32, #tpu.memory_space<vmem>>) attributes {dimension_semantics = [#tpu.dimension_semantics<parallel>], iteration_bounds = array<i64: 4>, scalar_prefetch = 0 : i64, scratch_operands = 0 : i64, tpu.core_type = #tpu.core_type<tc>, window_params = [{transform_indices = @transform_0, window_bounds = array<i64: 32, 16>}, {transform_indices = @transform_1, window_bounds = array<i64: 32, 64>}]} {
    %c0 = arith.constant 0 : index
    %c0_0 = arith.constant 0 : index
    %0 = vector.load %arg1[%c0, %c0_0] : memref<32x16xf32, #tpu.memory_space<vmem>>, vector<32x16xf32>
    %1 = tpu.iota {dimensions = array<i32: 1>} : vector<16x32xi32>
    %2 = tpu.iota {dimensions = array<i32: 0>} : vector<16x32xi32>
    %c16_i32 = arith.constant 16 : i32
    %3 = vector.broadcast %c16_i32 : i32 to vector<16x32xi32>
    %4 = arith.muli %1, %3 : vector<16x32xi32>
    %c32_i32 = arith.constant 32 : i32
    %5 = vector.broadcast %c32_i32 : i32 to vector<16x32xi32>
    %6 = arith.muli %2, %5 : vector<16x32xi32>
    %7 = arith.cmpi sle, %6, %4 : vector<16x32xi32>
    %c1_i32 = arith.constant 1 : i32
    %8 = vector.broadcast %c1_i32 : i32 to vector<16x32xi32>
    %9 = arith.addi %2, %8 : vector<16x32xi32>
    %c32_i32_1 = arith.constant 32 : i32
    %10 = vector.broadcast %c32_i32_1 : i32 to vector<16x32xi32>
    %11 = arith.muli %9, %10 : vector<16x32xi32>
    %12 = arith.cmpi slt, %4, %11 : vector<16x32xi32>
    %13 = arith.andi %7, %12 : vector<16x32xi1>
    %14 = arith.extui %13 : vector<16x32xi1> to vector<16x32xi32>
    %15 = arith.sitofp %14 : vector<16x32xi32> to vector<16x32xf32>
    %cst = arith.constant dense<0.000000e+00> : vector<32x32xf32>
    %16 = tpu.matmul %0, %15, %cst {dimension_numbers = #tpu.dot_dimension_numbers<[1], [0], [0], [1], [0, 0, 1, 1], [], []>} : vector<32x16xf32>, vector<16x32xf32>, vector<32x32xf32> -> vector<32x32xf32>
    %17 = tpu.concatenate %16, %16 in 1 : vector<32x32xf32>, vector<32x32xf32> -> vector<32x64xf32>
    %c0_2 = arith.constant 0 : index
    %c0_3 = arith.constant 0 : index
    %18 = vector.load %arg2[%c0_2, %c0_3] : memref<32x64xf32, #tpu.memory_space<vmem>>, vector<32x64xf32>
    tpu.vector_store %arg2[%c0_2, %c0_3], %17 {strides = array<i32>} : memref<32x64xf32, #tpu.memory_space<vmem>>, vector<32x64xf32>,
    return
  }
  func.func @transform_0(%arg0: i32) -> (i32, i32) {
    %c0_i32 = arith.constant 0 : i32
    %c0_i32_0 = arith.constant 0 : i32
    return %arg0, %c0_i32 : i32, i32
  }
  func.func @transform_1(%arg0: i32) -> (i32, i32) {
    %c0_i32 = arith.constant 0 : i32
    %c0_i32_0 = arith.constant 0 : i32
    return %arg0, %c0_i32 : i32, i32
  }
}

</mosaic_0001>

<bundles_post_ra>
// kernel: tpu_custom_call.1
= control target key start
LH: loop header
LB: loop body
LE: loop exit
PB: predicated region body
PF: predicated region fallthrough
CT: control target
= control target key end

     0   :  { %s395_s6 = smov 0   ;;  %s423_s0 = inlined_call_operand.vmem [shape: f32[128,16], index: 0, kind: input, shape index: {}]   ;;  %s424_s1 = inlined_call_operand.vmem [shape: f32[128,64], index: 1, kind: output, shape index: {}]  }
   0x1 LB: > { %s326_s7 = sadd.s32 4294967295, %s381_s6   ;;  %p330_p0 = scmp.ge.s32.totalorder %s381_s6, 1  ;;  %s381_s6 = sphi %s395_s6, %s11_s6  }
   0x2   : > { %p88_p1 = scmp.lt.s32.totalorder %s381_s6, 5 }
   0x4   : > { %p89_p2 = pnand %p330_p0, %p88_p1 }
   0x5   : > { %s331_s8 = sshll.u32 (!%p89_p2), %s326_s7, 2  ;;  %s384_s13 = smov (!%p89_p2), 32  }
   0x6   : > { %92 = sbr.rel (%p89_p2) target bundleno = 343 (0x157), region = 24  ;;  %p109_p3 = scmp.lt.s32.totalorder (!%p89_p2), %s331_s8, 15 }
   0xb   : > { %v124_v0 = vlaneseq  ;;  %s426_s8 = smov (!%p109_p3, %s331_s8), 15  ;;  %vm146_vm0 = vcmask 130048   ;;  %v383_v13 = vmov 1.0   ;;  %vm260_vm7 = vcmask 261120  }
   0xc   : > { %s332_s9 = sshll.u32 %s426_s8, 3  ;;  %vm265_vm8 = vcmask 523264  }
   0xd   : > { %v125_v1 = vand.u32 127, %v124_v0  ;;  %v127_v2 = vshrl.u32 %v124_v0, 7  ;;  %s112_s12 = scalar_lea.vmem %s423_s0, %s332_s9  ;;  %s118_s16 = scalar_lea.vmem %s424_s1, %s332_s9 }
   0xe   : > { %v120_v10 = vld [vmem:[%s112_s12] sm:$0xff]  ;;  %v122_v11 = vld [vmem:[%s112_s12 + $0x10] sm:$0xff]  ;;  %v121_v14 = vld [vmem:[%s112_s12 + $0x8] sm:$0xff] }
   0xf   : > { %v128_v3 = vadd.s32 8, %v127_v2  ;;  %v129_v4 = vmul.u32 16, %v125_v1  ;;  %v130_v5 = vmul.u32 32, %v127_v2  ;;  %v134_v6 = vadd.s32 1, %v127_v2  ;;  %355 = vmatprep.mubr.msk.f32.mxu0 %vm146_vm0, %v120_v10  ;;  %358 = vmatprep.mubr.msk.f32.mxu1 %vm146_vm0, %v122_v11  ;;  %v123_v15 = vld [vmem:[%s112_s12 + $0x18] sm:$0xff] }
  0x11   : > { %v131_v7 = vmul.u32 32, %v128_v3  ;;  %v135_v8 = vadd.s32 1, %v128_v3  ;;  %v136_v9 = vmul.u32 32, %v134_v6  ;;  %vm132_vm1 = vcmp.le.s32.totalorder %v130_v5, %v129_v4 }
  0x13   : > { %vm133_vm2 = vcmp.le.s32.totalorder %v131_v7, %v129_v4  ;;  %v137_v12 = vmul.u32 32, %v135_v8  ;;  %vm138_vm3 = vcmp.lt.s32.totalorder %v129_v4, %v136_v9 }
  0x14   : > { %vm140_vm5 = vmand %vm132_vm1, %vm138_vm3 }
  0x15   : > { %vm139_vm4 = vcmp.lt.s32.totalorder %v129_v4, %v137_v12 }
  0x16   : > { %vm141_vm6 = vmand %vm133_vm2, %vm139_vm4 }
  0x17   : > { %351 = vmatprep.subr.msk.mxu0 %vm141_vm6, %v383_v13  ;;  %361 = vmatprep.subr.msk.mxu1 %vm141_vm6, %v383_v13 }
  0x18   : > { %352 = vmatpush3.msk.msra.mxu0 %vm141_vm6, %v383_v13  ;;  %363 = vmatpush3.msk.msra.mxu1 %vm141_vm6, %v383_v13 }
  0x19   : > { %353 = vmatprep.subr.msk.mxu0 %vm140_vm5, %v383_v13  ;;  %362 = vmatprep.subr.msk.mxu1 %vm140_vm5, %v383_v13 }
  0x1a   : > { %354 = vmatpush3.msk.msra.mxu0 %vm140_vm5, %v383_v13  ;;  %364 = vmatpush3.msk.msra.mxu1 %vm140_vm5, %v383_v13 }
  0x1b   : > { %356 = vmatmul.mubr.msk.f32.vlgmr.msra.gmra.mxu0 %vm146_vm0, %v121_v14  ;;  %359 = vmatmul.mubr.msk.f32.vlgmr.msra.gmra.mxu1 %vm146_vm0, %v123_v15 }
  0xdb   : > { %v357_v16 = vpop.f32.mrf.mxu0  ;;  %v360_v17 = vpop.f32.mrf.mxu1 }
  0xdd   : > { %v225_v18 = vpop.f32.mrf.mxu0  ;;  %v235_v19 = vpop.f32.mrf.mxu1 }
  0xde   : > { %252 = vrot.lane.b32.xlu1 %v235_v19, %s384_s13  ;;  %248 = vrot.lane.b32.xlu0 %v225_v18, %s384_s13 }
  0xe2   : > { %254 = vrot.lane.b32.xlu1 %v360_v17, %s384_s13  ;;  %250 = vrot.lane.b32.xlu0 %v357_v16, %s384_s13 }
 0x150   : > { %v253_v20 = vpop.permute.xlu1 %252  ;;  %v249_v21 = vpop.permute.xlu0 %248 }
 0x151   : > { %v263_v22 = vsel %vm260_vm7, %v235_v19, %v253_v20  ;;  %v261_v23 = vsel %vm260_vm7, %v225_v18, %v249_v21 }
 0x152   : > { %268 = vst.msk [vmem:[%s118_s16 + $0x10] sm:$0xff] %vm265_vm8, %v263_v22  ;;  %266 = vst.msk [vmem:[%s118_s16] sm:$0xff] %vm265_vm8, %v261_v23 }
 0x154   : > { %v255_v24 = vpop.permute.xlu1 %254  ;;  %v251_v25 = vpop.permute.xlu0 %250 }
 0x155   : > { %v264_v26 = vsel %vm260_vm7, %v360_v17, %v255_v24  ;;  %v262_v27 = vsel %vm260_vm7, %v357_v16, %v251_v25 }
 0x156   : > { %269 = vst.msk [vmem:[%s118_s16 + $0x18] sm:$0xff] %vm265_vm8, %v264_v26  ;;  %267 = vst.msk [vmem:[%s118_s16 + $0x8] sm:$0xff] %vm265_vm8, %v262_v27 }
 0x157 PF: > { %s11_s6 = sadd.s32 1, %s381_s6  }
 0x158   : > { %p8_p4 = scmp.ge.s32.totalorder %s11_s6, 6  }
 0x15a   :  { %10 = sbr.rel (!%p8_p4) target bundleno = 1 (0x1), region = 54 }

</bundles_post_ra>
